<compile_context>
chip_gen: v7x
topology: tpu7x:2x2x1
jax: 0.10.0
libtpu: 0.0.40
codegen_flags: <defaults>
</compile_context>

<pallas_src>
import jax
import jax.numpy as jnp
from jax.experimental import pallas as pl
from jax.experimental.pallas import tpu as pltpu

N_CLS_LAYERS = 5  # torch.cat([outs[-i][:, 0] for i in range(1, 6)], dim=-1)


def _round_up(x: int, m: int) -> int:
    return ((x + m - 1) // m) * m


def _cdiv(a: int, b: int) -> int:
    return -(-a // b)


def ranker_kernel(x_ref, w_ref, b_ref, o_ref):
    """Fused CLS-concat + linear ranker head.

    x_ref: [5, TB, Hp] bf16   CLS rows of the last 5 layers (batch tile)
    w_ref: [5, Hp, Np] bf16   ranker weight, per-layer slices of the [5H, N] matrix
    b_ref: [1, Np]     f32    ranker bias
    o_ref: [TB, Np]    f32    logits tile
    """
    acc = jnp.zeros(o_ref.shape, jnp.float32)
    # 5 MXU dots over K=H each with a shared f32 accumulator -- identical math
    # to the single K=5H contraction, no in-kernel transpose/concat needed.
    for l in range(N_CLS_LAYERS):
        acc += jnp.dot(x_ref[l], w_ref[l], preferred_element_type=jnp.float32)
    # TODO(synk): nn.Dropout is identity at inference; training-mode dropout
    # (pltpu.prng_random_bits mask) is not applied here.
    o_ref[...] = (acc + b_ref[...]).astype(o_ref.dtype)


def prepare_ranker_params(w_full, b, hidden_size):
    """One-time (init-time) weight/bias prep -- keep out of the per-call hot path.

    w_full: [5*H, N]  torch Linear weight already transposed to [in, out].
    b:      [1, N]    bias.
    """
    K, N = w_full.shape
    assert K == N_CLS_LAYERS * hidden_size, (
        "w_full must be the torch Linear weight transposed to [5*H, n_labels]; "
        f"got {w_full.shape} with H={hidden_size}")
    Hp = _round_up(hidden_size, 128)
    Np = _round_up(N, 128)
    # Layer-major reshape matches torch.cat order: slice i <-> outs[-(i+1)][:, 0].
    w5 = w_full.reshape(N_CLS_LAYERS, hidden_size, N)
    w5 = jnp.pad(w5, ((0, 0), (0, Hp - hidden_size), (0, Np - N))).astype(jnp.bfloat16)
    bias = jnp.pad(jnp.asarray(b, jnp.float32).reshape(1, N), ((0, 0), (0, Np - N)))
    return {"w": w5, "bias": bias, "H": hidden_size, "N": N, "Hp": Hp, "Np": Np}


def _ranker_pallas_call(x, w, bias, *, tb, Bp, Hp, Np, single_buffer_params):
    if single_buffer_params:
        # Weight/bias never change across the grid -> one VMEM buffer each.
        w_spec = pl.BlockSpec((N_CLS_LAYERS, Hp, Np), lambda i: (0, 0, 0),
                              pipeline_mode=pl.Buffered(1))
        b_spec = pl.BlockSpec((1, Np), lambda i: (0, 0),
                              pipeline_mode=pl.Buffered(1))
    else:
        w_spec = pl.BlockSpec((N_CLS_LAYERS, Hp, Np), lambda i: (0, 0, 0))
        b_spec = pl.BlockSpec((1, Np), lambda i: (0, 0))
    return pl.pallas_call(
        ranker_kernel,
        out_shape=jax.ShapeDtypeStruct((Bp, Np), jnp.float32),
        grid_spec=pltpu.PrefetchScalarGridSpec(
            num_scalar_prefetch=0,
            grid=(Bp // tb,),
            in_specs=[
                pl.BlockSpec((N_CLS_LAYERS, tb, Hp), lambda i: (0, i, 0)),  # CLS slab
                w_spec,                                                     # weight (resident)
                b_spec,                                                     # bias
            ],
            out_specs=pl.BlockSpec((tb, Np), lambda i: (i, 0)),
        ),
        compiler_params=pltpu.CompilerParams(
            dimension_semantics=("parallel",),
            # Keep the 512-row tile double-buffered even on v5e's 16 MiB
            # scoped-VMEM default; well under v7x's 64 MiB physical VMEM.
            vmem_limit_bytes=32 * 1024 * 1024,
        ),
    )(x, w, bias)


def ranker_forward(cls_lbh, params, *, block_b=512):
    """cls_lbh: [5, B, H] CLS rows -> [B, n_labels] f32 logits."""
    w, bias = params["w"], params["bias"]
    H, N, Hp, Np = params["H"], params["N"], params["Hp"], params["Np"]
    L, B, Hin = cls_lbh.shape
    assert L == N_CLS_LAYERS and Hin == H

    # Balanced batch tiling: tb multiple of 8, tail tile never mostly padding,
    # and an even grid for B > block_b so v7x's two TensorCores both get work.
    if B <= block_b:
        num_tiles = 1
    else:
        num_tiles = 2 * _cdiv(B, 2 * block_b)
    tb = _round_up(_cdiv(B, num_tiles), 8)
    Bp = tb * num_tiles

    x = cls_lbh if cls_lbh.dtype == jnp.bfloat16 else cls_lbh.astype(jnp.bfloat16)
    if (Bp, Hp) != (B, H):  # skip the pad copy entirely when already aligned
        x = jnp.pad(x, ((0, 0), (0, Bp - B), (0, Hp - H)))

    try:
        out = _ranker_pallas_call(x, w, bias, tb=tb, Bp=Bp, Hp=Hp, Np=Np,
                                  single_buffer_params=True)
    except Exception:  # noqa: BLE001
        # TODO(synk): pipeline_mode=pl.Buffered(1) unsupported on this jax build;
        # fall back to default double-buffered weight/bias (~1 MB extra VMEM).
        out = _ranker_pallas_call(x, w, bias, tb=tb, Bp=Bp, Hp=Hp, Np=Np,
                                  single_buffer_params=False)
    return out[:B, :N]


def model_forward(all_hidden_states, params):
    """Mirror of Model.forward, starting from the BERT hidden-state stack.

    all_hidden_states: [n_layers+1, B, S, H] (output_hidden_states, stacked).
    """
    # TODO(synk): the pretrained BERT encoder producing `all_hidden_states`
    # is an external module and is not re-implemented here.
    # CLS rows of the last 5 layers, in torch.cat order: outs[-1], ..., outs[-5].
    # bf16 cast is fused with the slice; this [5, B, H] slab is the kernel's
    # only activation input -- no transpose/reshape re-materialization.
    cls = all_hidden_states[-1:-6:-1, :, 0, :].astype(jnp.bfloat16)
    return ranker_forward(cls, params)


if __name__ == "__main__":
    # Small synthetic shapes consistent with the forward pass.
    B, S, H = 2, 8, 32          # batch, seq_len, hidden
    L_TOTAL = 7                 # embeddings + 6 layers of hidden states
    N_LABELS = 10               # self.n_labels (small; exercises lane padding)

    key = jax.random.PRNGKey(0)
    k_hs, k_w, k_b = jax.random.split(key, 3)

    # Synthetic BERT hidden states (stand-in for bert_model(...) outputs).
    all_hidden_states = jax.random.normal(
        k_hs, (L_TOTAL, B, S, H), dtype=jnp.float32)

    # Ranker parameters: Linear(5*H -> N_LABELS); torch weight [N, 5H] transposed.
    w_full = jax.random.normal(k_w, (5 * H, N_LABELS), dtype=jnp.float32) * 0.02
    b = jax.random.normal(k_b, (1, N_LABELS), dtype=jnp.float32) * 0.02

    params = prepare_ranker_params(w_full, b, H)   # one-time init-time prep
    out = model_forward(all_hidden_states, params)
    out = jax.block_until_ready(out)

    # Pure-JAX reference (concat CLS of last 5 layers, then linear), using the
    # same bf16 rounding of activations/weights the kernel applies, f32 acc.
    cls_concat = jnp.concatenate(
        [all_hidden_states[-i][:, 0] for i in range(1, 6)], axis=-1)  # [B, 5H]
    ref = (cls_concat.astype(jnp.bfloat16).astype(jnp.float32)
           @ w_full.astype(jnp.bfloat16).astype(jnp.float32)) + b

    assert out.shape == (B, N_LABELS)
    assert jnp.allclose(out, ref, atol=2e-3, rtol=2e-3)

    print("KERNEL_OK")
</pallas_src>

<mosaic_0001>
module attributes {stable_mosaic.version = 11 : i64} {
  func.func @ranker_kernel(%arg0: i32, %arg1: memref<5x8x128xbf16, #tpu.memory_space<vmem>>, %arg2: memref<5x128x128xbf16, #tpu.memory_space<vmem>>, %arg3: memref<1x128xf32, #tpu.memory_space<vmem>>, %arg4: memref<8x128xf32, #tpu.memory_space<vmem>>) attributes {dimension_semantics = [#tpu.dimension_semantics<parallel>], iteration_bounds = array<i64: 1>, scalar_prefetch = 0 : i64, scratch_operands = 0 : i64, tpu.core_type = #tpu.core_type<tc>, window_params = [{transform_indices = @transform_0, window_bounds = array<i64: 5, 8, 128>}, {pipeline_mode = #tpu.pipeline_mode<synchronous>, transform_indices = @transform_1, window_bounds = array<i64: 5, 128, 128>}, {pipeline_mode = #tpu.pipeline_mode<synchronous>, transform_indices = @transform_2, window_bounds = array<i64: 1, 128>}, {transform_indices = @transform_3, window_bounds = array<i64: 8, 128>}]} {
    %cst = arith.constant 0.000000e+00 : f32
    %0 = vector.broadcast %cst : f32 to vector<8x128xf32>
    %c0 = arith.constant 0 : index
    %c0_0 = arith.constant 0 : index
    %c0_1 = arith.constant 0 : index
    %1 = vector.load %arg1[%c0, %c0_0, %c0_1] : memref<5x8x128xbf16, #tpu.memory_space<vmem>>, vector<1x8x128xbf16>
    %2 = vector.shape_cast %1 : vector<1x8x128xbf16> to vector<8x128xbf16>
    %c0_2 = arith.constant 0 : index
    %c0_3 = arith.constant 0 : index
    %c0_4 = arith.constant 0 : index
    %3 = vector.load %arg2[%c0_2, %c0_3, %c0_4] : memref<5x128x128xbf16, #tpu.memory_space<vmem>>, vector<1x128x128xbf16>
    %4 = vector.shape_cast %3 : vector<1x128x128xbf16> to vector<128x128xbf16>
    %cst_5 = arith.constant dense<0.000000e+00> : vector<8x128xf32>
    %5 = tpu.matmul %2, %4, %cst_5 {dimension_numbers = #tpu.dot_dimension_numbers<[1], [0], [0], [1], [0, 0, 1, 1], [], []>} : vector<8x128xbf16>, vector<128x128xbf16>, vector<8x128xf32> -> vector<8x128xf32>
    %6 = arith.addf %0, %5 : vector<8x128xf32>
    %c1 = arith.constant 1 : index
    %c0_6 = arith.constant 0 : index
    %c0_7 = arith.constant 0 : index
    %7 = vector.load %arg1[%c1, %c0_6, %c0_7] : memref<5x8x128xbf16, #tpu.memory_space<vmem>>, vector<1x8x128xbf16>
    %8 = vector.shape_cast %7 : vector<1x8x128xbf16> to vector<8x128xbf16>
    %c1_8 = arith.constant 1 : index
    %c0_9 = arith.constant 0 : index
    %c0_10 = arith.constant 0 : index
    %9 = vector.load %arg2[%c1_8, %c0_9, %c0_10] : memref<5x128x128xbf16, #tpu.memory_space<vmem>>, vector<1x128x128xbf16>
    %10 = vector.shape_cast %9 : vector<1x128x128xbf16> to vector<128x128xbf16>
    %cst_11 = arith.constant dense<0.000000e+00> : vector<8x128xf32>
    %11 = tpu.matmul %8, %10, %cst_11 {dimension_numbers = #tpu.dot_dimension_numbers<[1], [0], [0], [1], [0, 0, 1, 1], [], []>} : vector<8x128xbf16>, vector<128x128xbf16>, vector<8x128xf32> -> vector<8x128xf32>
    %12 = arith.addf %6, %11 : vector<8x128xf32>
    %c2 = arith.constant 2 : index
    %c0_12 = arith.constant 0 : index
    %c0_13 = arith.constant 0 : index
    %13 = vector.load %arg1[%c2, %c0_12, %c0_13] : memref<5x8x128xbf16, #tpu.memory_space<vmem>>, vector<1x8x128xbf16>
    %14 = vector.shape_cast %13 : vector<1x8x128xbf16> to vector<8x128xbf16>
    %c2_14 = arith.constant 2 : index
    %c0_15 = arith.constant 0 : index
    %c0_16 = arith.constant 0 : index
    %15 = vector.load %arg2[%c2_14, %c0_15, %c0_16] : memref<5x128x128xbf16, #tpu.memory_space<vmem>>, vector<1x128x128xbf16>
    %16 = vector.shape_cast %15 : vector<1x128x128xbf16> to vector<128x128xbf16>
    %cst_17 = arith.constant dense<0.000000e+00> : vector<8x128xf32>
    %17 = tpu.matmul %14, %16, %cst_17 {dimension_numbers = #tpu.dot_dimension_numbers<[1], [0], [0], [1], [0, 0, 1, 1], [], []>} : vector<8x128xbf16>, vector<128x128xbf16>, vector<8x128xf32> -> vector<8x128xf32>
    %18 = arith.addf %12, %17 : vector<8x128xf32>
    %c3 = arith.constant 3 : index
    %c0_18 = arith.constant 0 : index
    %c0_19 = arith.constant 0 : index
    %19 = vector.load %arg1[%c3, %c0_18, %c0_19] : memref<5x8x128xbf16, #tpu.memory_space<vmem>>, vector<1x8x128xbf16>
    %20 = vector.shape_cast %19 : vector<1x8x128xbf16> to vector<8x128xbf16>
    %c3_20 = arith.constant 3 : index
    %c0_21 = arith.constant 0 : index
    %c0_22 = arith.constant 0 : index
    %21 = vector.load %arg2[%c3_20, %c0_21, %c0_22] : memref<5x128x128xbf16, #tpu.memory_space<vmem>>, vector<1x128x128xbf16>
    %22 = vector.shape_cast %21 : vector<1x128x128xbf16> to vector<128x128xbf16>
    %cst_23 = arith.constant dense<0.000000e+00> : vector<8x128xf32>
    %23 = tpu.matmul %20, %22, %cst_23 {dimension_numbers = #tpu.dot_dimension_numbers<[1], [0], [0], [1], [0, 0, 1, 1], [], []>} : vector<8x128xbf16>, vector<128x128xbf16>, vector<8x128xf32> -> vector<8x128xf32>
    %24 = arith.addf %18, %23 : vector<8x128xf32>
    %c4 = arith.constant 4 : index
    %c0_24 = arith.constant 0 : index
    %c0_25 = arith.constant 0 : index
    %25 = vector.load %arg1[%c4, %c0_24, %c0_25] : memref<5x8x128xbf16, #tpu.memory_space<vmem>>, vector<1x8x128xbf16>
    %26 = vector.shape_cast %25 : vector<1x8x128xbf16> to vector<8x128xbf16>
    %c4_26 = arith.constant 4 : index
    %c0_27 = arith.constant 0 : index
    %c0_28 = arith.constant 0 : index
    %27 = vector.load %arg2[%c4_26, %c0_27, %c0_28] : memref<5x128x128xbf16, #tpu.memory_space<vmem>>, vector<1x128x128xbf16>
    %28 = vector.shape_cast %27 : vector<1x128x128xbf16> to vector<128x128xbf16>
    %cst_29 = arith.constant dense<0.000000e+00> : vector<8x128xf32>
    %29 = tpu.matmul %26, %28, %cst_29 {dimension_numbers = #tpu.dot_dimension_numbers<[1], [0], [0], [1], [0, 0, 1, 1], [], []>} : vector<8x128xbf16>, vector<128x128xbf16>, vector<8x128xf32> -> vector<8x128xf32>
    %30 = arith.addf %24, %29 : vector<8x128xf32>
    %c0_30 = arith.constant 0 : index
    %c0_31 = arith.constant 0 : index
    %31 = vector.load %arg3[%c0_30, %c0_31] : memref<1x128xf32, #tpu.memory_space<vmem>>, vector<1x128xf32>
    %32 = vector.broadcast %31 : vector<1x128xf32> to vector<8x128xf32>
    %33 = arith.addf %30, %32 : vector<8x128xf32>
    %c0_32 = arith.constant 0 : index
    %c0_33 = arith.constant 0 : index
    %34 = vector.load %arg4[%c0_32, %c0_33] : memref<8x128xf32, #tpu.memory_space<vmem>>, vector<8x128xf32>
    tpu.vector_store %arg4[%c0_32, %c0_33], %33 {strides = array<i32>} : memref<8x128xf32, #tpu.memory_space<vmem>>, vector<8x128xf32>,
    return
  }
  func.func @transform_0(%arg0: i32) -> (i32, i32, i32) {
    %c0_i32 = arith.constant 0 : i32
    %c0_i32_0 = arith.constant 0 : i32
    %c0_i32_1 = arith.constant 0 : i32
    return %c0_i32, %arg0, %c0_i32_0 : i32, i32, i32
  }
  func.func @transform_1(%arg0: i32) -> (i32, i32, i32) {
    %c0_i32 = arith.constant 0 : i32
    %c0_i32_0 = arith.constant 0 : i32
    %c0_i32_1 = arith.constant 0 : i32
    %c0_i32_2 = arith.constant 0 : i32
    return %c0_i32, %c0_i32_0, %c0_i32_1 : i32, i32, i32
  }
  func.func @transform_2(%arg0: i32) -> (i32, i32) {
    %c0_i32 = arith.constant 0 : i32
    %c0_i32_0 = arith.constant 0 : i32
    %c0_i32_1 = arith.constant 0 : i32
    return %c0_i32, %c0_i32_0 : i32, i32
  }
  func.func @transform_3(%arg0: i32) -> (i32, i32) {
    %c0_i32 = arith.constant 0 : i32
    %c0_i32_0 = arith.constant 0 : i32
    return %arg0, %c0_i32 : i32, i32
  }
}

module attributes {stable_mosaic.version = 11 : i64} {
  func.func @ranker_kernel(%arg0: i32, %arg1: memref<5x8x128xbf16, #tpu.memory_space<vmem>>, %arg2: memref<5x128x128xbf16, #tpu.memory_space<vmem>>, %arg3: memref<1x128xf32, #tpu.memory_space<vmem>>, %arg4: memref<8x128xf32, #tpu.memory_space<vmem>>) attributes {dimension_semantics = [#tpu.dimension_semantics<parallel>], iteration_bounds = array<i64: 1>, scalar_prefetch = 0 : i64, scratch_operands = 0 : i64, tpu.core_type = #tpu.core_type<tc>, window_params = [{transform_indices = @transform_0, window_bounds = array<i64: 5, 8, 128>}, {pipeline_mode = #tpu.pipeline_mode<synchronous>, transform_indices = @transform_1, window_bounds = array<i64: 5, 128, 128>}, {pipeline_mode = #tpu.pipeline_mode<synchronous>, transform_indices = @transform_2, window_bounds = array<i64: 1, 128>}, {transform_indices = @transform_3, window_bounds = array<i64: 8, 128>}]} {
    %cst = arith.constant 0.000000e+00 : f32
    %0 = vector.broadcast %cst : f32 to vector<8x128xf32>
    %c0 = arith.constant 0 : index
    %c0_0 = arith.constant 0 : index
    %c0_1 = arith.constant 0 : index
    %1 = vector.load %arg1[%c0, %c0_0, %c0_1] : memref<5x8x128xbf16, #tpu.memory_space<vmem>>, vector<1x8x128xbf16>
    %2 = vector.shape_cast %1 : vector<1x8x128xbf16> to vector<8x128xbf16>
    %c0_2 = arith.constant 0 : index
    %c0_3 = arith.constant 0 : index
    %c0_4 = arith.constant 0 : index
    %3 = vector.load %arg2[%c0_2, %c0_3, %c0_4] : memref<5x128x128xbf16, #tpu.memory_space<vmem>>, vector<1x128x128xbf16>
    %4 = vector.shape_cast %3 : vector<1x128x128xbf16> to vector<128x128xbf16>
    %cst_5 = arith.constant dense<0.000000e+00> : vector<8x128xf32>
    %5 = tpu.matmul %2, %4, %cst_5 {dimension_numbers = #tpu.dot_dimension_numbers<[1], [0], [0], [1], [0, 0, 1, 1], [], []>} : vector<8x128xbf16>, vector<128x128xbf16>, vector<8x128xf32> -> vector<8x128xf32>
    %6 = arith.addf %0, %5 : vector<8x128xf32>
    %c1 = arith.constant 1 : index
    %c0_6 = arith.constant 0 : index
    %c0_7 = arith.constant 0 : index
    %7 = vector.load %arg1[%c1, %c0_6, %c0_7] : memref<5x8x128xbf16, #tpu.memory_space<vmem>>, vector<1x8x128xbf16>
    %8 = vector.shape_cast %7 : vector<1x8x128xbf16> to vector<8x128xbf16>
    %c1_8 = arith.constant 1 : index
    %c0_9 = arith.constant 0 : index
    %c0_10 = arith.constant 0 : index
    %9 = vector.load %arg2[%c1_8, %c0_9, %c0_10] : memref<5x128x128xbf16, #tpu.memory_space<vmem>>, vector<1x128x128xbf16>
    %10 = vector.shape_cast %9 : vector<1x128x128xbf16> to vector<128x128xbf16>
    %cst_11 = arith.constant dense<0.000000e+00> : vector<8x128xf32>
    %11 = tpu.matmul %8, %10, %cst_11 {dimension_numbers = #tpu.dot_dimension_numbers<[1], [0], [0], [1], [0, 0, 1, 1], [], []>} : vector<8x128xbf16>, vector<128x128xbf16>, vector<8x128xf32> -> vector<8x128xf32>
    %12 = arith.addf %6, %11 : vector<8x128xf32>
    %c2 = arith.constant 2 : index
    %c0_12 = arith.constant 0 : index
    %c0_13 = arith.constant 0 : index
    %13 = vector.load %arg1[%c2, %c0_12, %c0_13] : memref<5x8x128xbf16, #tpu.memory_space<vmem>>, vector<1x8x128xbf16>
    %14 = vector.shape_cast %13 : vector<1x8x128xbf16> to vector<8x128xbf16>
    %c2_14 = arith.constant 2 : index
    %c0_15 = arith.constant 0 : index
    %c0_16 = arith.constant 0 : index
    %15 = vector.load %arg2[%c2_14, %c0_15, %c0_16] : memref<5x128x128xbf16, #tpu.memory_space<vmem>>, vector<1x128x128xbf16>
    %16 = vector.shape_cast %15 : vector<1x128x128xbf16> to vector<128x128xbf16>
    %cst_17 = arith.constant dense<0.000000e+00> : vector<8x128xf32>
    %17 = tpu.matmul %14, %16, %cst_17 {dimension_numbers = #tpu.dot_dimension_numbers<[1], [0], [0], [1], [0, 0, 1, 1], [], []>} : vector<8x128xbf16>, vector<128x128xbf16>, vector<8x128xf32> -> vector<8x128xf32>
    %18 = arith.addf %12, %17 : vector<8x128xf32>
    %c3 = arith.constant 3 : index
    %c0_18 = arith.constant 0 : index
    %c0_19 = arith.constant 0 : index
    %19 = vector.load %arg1[%c3, %c0_18, %c0_19] : memref<5x8x128xbf16, #tpu.memory_space<vmem>>, vector<1x8x128xbf16>
    %20 = vector.shape_cast %19 : vector<1x8x128xbf16> to vector<8x128xbf16>
    %c3_20 = arith.constant 3 : index
    %c0_21 = arith.constant 0 : index
    %c0_22 = arith.constant 0 : index
    %21 = vector.load %arg2[%c3_20, %c0_21, %c0_22] : memref<5x128x128xbf16, #tpu.memory_space<vmem>>, vector<1x128x128xbf16>
    %22 = vector.shape_cast %21 : vector<1x128x128xbf16> to vector<128x128xbf16>
    %cst_23 = arith.constant dense<0.000000e+00> : vector<8x128xf32>
    %23 = tpu.matmul %20, %22, %cst_23 {dimension_numbers = #tpu.dot_dimension_numbers<[1], [0], [0], [1], [0, 0, 1, 1], [], []>} : vector<8x128xbf16>, vector<128x128xbf16>, vector<8x128xf32> -> vector<8x128xf32>
    %24 = arith.addf %18, %23 : vector<8x128xf32>
    %c4 = arith.constant 4 : index
    %c0_24 = arith.constant 0 : index
    %c0_25 = arith.constant 0 : index
    %25 = vector.load %arg1[%c4, %c0_24, %c0_25] : memref<5x8x128xbf16, #tpu.memory_space<vmem>>, vector<1x8x128xbf16>
    %26 = vector.shape_cast %25 : vector<1x8x128xbf16> to vector<8x128xbf16>
    %c4_26 = arith.constant 4 : index
    %c0_27 = arith.constant 0 : index
    %c0_28 = arith.constant 0 : index
    %27 = vector.load %arg2[%c4_26, %c0_27, %c0_28] : memref<5x128x128xbf16, #tpu.memory_space<vmem>>, vector<1x128x128xbf16>
    %28 = vector.shape_cast %27 : vector<1x128x128xbf16> to vector<128x128xbf16>
    %cst_29 = arith.constant dense<0.000000e+00> : vector<8x128xf32>
    %29 = tpu.matmul %26, %28, %cst_29 {dimension_numbers = #tpu.dot_dimension_numbers<[1], [0], [0], [1], [0, 0, 1, 1], [], []>} : vector<8x128xbf16>, vector<128x128xbf16>, vector<8x128xf32> -> vector<8x128xf32>
    %30 = arith.addf %24, %29 : vector<8x128xf32>
    %c0_30 = arith.constant 0 : index
    %c0_31 = arith.constant 0 : index
    %31 = vector.load %arg3[%c0_30, %c0_31] : memref<1x128xf32, #tpu.memory_space<vmem>>, vector<1x128xf32>
    %32 = vector.broadcast %31 : vector<1x128xf32> to vector<8x128xf32>
    %33 = arith.addf %30, %32 : vector<8x128xf32>
    %c0_32 = arith.constant 0 : index
    %c0_33 = arith.constant 0 : index
    %34 = vector.load %arg4[%c0_32, %c0_33] : memref<8x128xf32, #tpu.memory_space<vmem>>, vector<8x128xf32>
    tpu.vector_store %arg4[%c0_32, %c0_33], %33 {strides = array<i32>} : memref<8x128xf32, #tpu.memory_space<vmem>>, vector<8x128xf32>,
    return
  }
  func.func @transform_0(%arg0: i32) -> (i32, i32, i32) {
    %c0_i32 = arith.constant 0 : i32
    %c0_i32_0 = arith.constant 0 : i32
    %c0_i32_1 = arith.constant 0 : i32
    return %c0_i32, %arg0, %c0_i32_0 : i32, i32, i32
  }
  func.func @transform_1(%arg0: i32) -> (i32, i32, i32) {
    %c0_i32 = arith.constant 0 : i32
    %c0_i32_0 = arith.constant 0 : i32
    %c0_i32_1 = arith.constant 0 : i32
    %c0_i32_2 = arith.constant 0 : i32
    return %c0_i32, %c0_i32_0, %c0_i32_1 : i32, i32, i32
  }
  func.func @transform_2(%arg0: i32) -> (i32, i32) {
    %c0_i32 = arith.constant 0 : i32
    %c0_i32_0 = arith.constant 0 : i32
    %c0_i32_1 = arith.constant 0 : i32
    return %c0_i32, %c0_i32_0 : i32, i32
  }
  func.func @transform_3(%arg0: i32) -> (i32, i32) {
    %c0_i32 = arith.constant 0 : i32
    %c0_i32_0 = arith.constant 0 : i32
    return %arg0, %c0_i32 : i32, i32
  }
}

</mosaic_0001>

<bundles_post_ra>
// kernel: tpu_custom_call.1
= control target key start
LH: loop header
LB: loop body
LE: loop exit
PB: predicated region body
PF: predicated region fallthrough
CT: control target
= control target key end

     0   :  { %8 = vsyncpa [#allocation3], 0  ;;  %s1026_s0 = inlined_call_operand.hbm [shape: bf16[5,8,128], index: 0, kind: input, shape index: {}]   ;;  %s1027_s1 = inlined_call_operand.hbm [shape: bf16[5,128,128], index: 1, kind: input, shape index: {}]   ;;  %s1028_s2 = inlined_call_operand.vmem [shape: f32[1,128], index: 2, kind: input, shape index: {}]   ;;  %s1029_s3 = inlined_call_operand.hbm [shape: f32[8,128], index: 3, kind: output, shape index: {}]  }
   0x1   :  { %9 = vsyncpa [#allocation6], 0 }
   0x2   :  { %10 = vsyncpa [#allocation4], 0  ;;  %s910_s12 = smov [#allocation2]   ;;  %s838_s16 = scalar_lea.hbm %s1026_s0, 320 }
   0x3   :  { %s16_s13 = sshll.u32 %s910_s12, 4  ;;  %p839_p0 = scmp.ne.s32.totalorder %s1026_s0, %s838_s16  ;;  %s17_s13 = int_to_ptr.vmem [resolvable:$true] %s16_s13 }
   0x4   :  { %p842_p1 = scmp.lt.u32.totalorder %s838_s16, %s1026_s0 }
   0x6   :  { %p844_p2 = pnand %p842_p1, %p839_p0 }
   0x8   :  { %847 = shalt.err (!%p844_p2)
}
   0x9   :  { %s848_s21 = scalar_lea.vmem %s17_s13, 320  ;;  %p853_p4 = scmp.lt.s32.totalorder %s17_s13, %s17_s13 }
   0xa   :  { %p849_p3 = scmp.ne.s32.totalorder %s17_s13, %s848_s21  ;;  %p854_p5 = scmp.lt.s32.totalorder %s848_s21, %s848_s21 }
   0xc   :  { %p855_p6 = por %p854_p5, %p853_p4 }
   0xe   :  { %p856_p7 = pnand %p855_p6, %p849_p3 }
  0x10   :  { %859 = shalt.err (!%p856_p7)
}
  0x11   :  { %s911_s22 = smov 64   ;;  %s912_s23 = smov 4  }
  0x12   :  { %22 = dma.hbm_to_vmem [thread:$0]  %s1026_s0, 320, %s17_s13, [#allocation3], %s911_s22, %s911_s22, %s912_s23  }
  0x13   :  { %s913_s26 = smov [#allocation5]   ;;  %s860_s30 = scalar_lea.hbm %s1027_s1, 5120 }
  0x14   :  { %s28_s27 = sshll.u32 %s913_s26, 4  ;;  %p861_p8 = scmp.ne.s32.totalorder %s1027_s1, %s860_s30  ;;  %s29_s27 = int_to_ptr.vmem [resolvable:$true] %s28_s27 }
  0x15   :  { %p864_p9 = scmp.lt.u32.totalorder %s860_s30, %s1027_s1 }
  0x17   :  { %p866_p10 = pnand %p864_p9, %p861_p8 }
  0x19   :  { %869 = shalt.err (!%p866_p10)
}
  0x1a   :  { %s870_s8 = scalar_lea.vmem %s29_s27, 5120  ;;  %p875_p12 = scmp.lt.s32.totalorder %s29_s27, %s29_s27 }
  0x1b   :  { %p871_p11 = scmp.ne.s32.totalorder %s29_s27, %s870_s8  ;;  %p876_p13 = scmp.lt.s32.totalorder %s870_s8, %s870_s8 }
  0x1d   :  { %p877_p0 = por %p876_p13, %p875_p12 }
  0x1f   :  { %p878_p1 = pnand %p877_p0, %p871_p11 }
  0x21   :  { %881 = shalt.err (!%p878_p1)
}
  0x22   :  { %34 = dma.hbm_to_vmem [thread:$0]  %s1027_s1, 5120, %s29_s27, [#allocation6], %s911_s22, %s911_s22, %s912_s23  }
  0x23   :  { %904 = dma.done.wait [#allocation3], 320  }
  0x24   :  { %905 = vsyncadd [#allocation3], 4294966976 }
  0x25   :  { %906 = dma.done.wait [#allocation6], 5120  }
  0x26   :  { %907 = vsyncadd [#allocation6], 4294962176  ;;  %v914_v0 = vmov 0.0   ;;  %vm915_vm0 = vmmov 0   ;;  %v798_v1 = vld [vmem:[#allocation5 + $0x40] sm:$0xff]   ;;  %v800_v3 = vld [vmem:[#allocation5 + $0x48] sm:$0xff]  }
  0x27   :  { %691 = vmatprep.subr.bf16.mxu0 %v914_v0  ;;  %711 = vmatprep.subr.bf16.mxu1 %v914_v0  ;;  %v799_v2 = vld [vmem:[#allocation5] sm:$0xff]   ;;  %v801_v4 = vld [vmem:[#allocation5 + $0x8] sm:$0xff]   ;;  %v802_v5 = vld [vmem:[#allocation5 + $0x50] sm:$0xff]   ;;  %s916_s11 = smov [#allocation7]  }
  0x28   :  { %707 = vmatprep.mubr.msk.bf16.mxu0 %vm915_vm0, %v914_v0  ;;  %727 = vmatprep.mubr.msk.bf16.mxu1 %vm915_vm0, %v914_v0  ;;  %v803_v6 = vld [vmem:[#allocation5 + $0x10] sm:$0xff]   ;;  %v804_v7 = vld [vmem:[#allocation5 + $0x58] sm:$0xff]   ;;  %v806_v9 = vld [vmem:[#allocation5 + $0x60] sm:$0xff]   ;;  %s595_s12 = sshll.u32 %s916_s11, 4  ;;  %s596_s12 = int_to_ptr.vmem [resolvable:$true] %s595_s12 }
  0x29   :  { %692 = vmatpush3.bf16.msra.mxu0 %v798_v1  ;;  %712 = vmatpush3.bf16.msra.mxu1 %v799_v2  ;;  %v805_v8 = vld [vmem:[#allocation5 + $0x18] sm:$0xff]   ;;  %v807_v10 = vld [vmem:[#allocation5 + $0x20] sm:$0xff]   ;;  %v808_v11 = vld [vmem:[#allocation5 + $0x68] sm:$0xff]   ;;  %s882_s13 = scalar_lea.vmem %s596_s12, 128  ;;  %p887_p3 = scmp.lt.s32.totalorder %s596_s12, %s596_s12 }
  0x2a   :  { %693 = vmatprep.subr.bf16.mxu0 %v914_v0  ;;  %713 = vmatprep.subr.bf16.mxu1 %v914_v0  ;;  %v809_v12 = vld [vmem:[#allocation5 + $0x28] sm:$0xff]   ;;  %v810_v13 = vld [vmem:[#allocation5 + $0x70] sm:$0xff]   ;;  %v812_v15 = vld [vmem:[#allocation5 + $0x78] sm:$0xff]   ;;  %p883_p2 = scmp.ne.s32.totalorder %s596_s12, %s882_s13  ;;  %p888_p4 = scmp.lt.s32.totalorder %s882_s13, %s882_s13 }
  0x2b   :  { %v811_v14 = vld [vmem:[#allocation5 + $0x30] sm:$0xff]   ;;  %v813_v16 = vld [vmem:[#allocation5 + $0x38] sm:$0xff]   ;;  %v44_v18 = vld [vmem:[#allocation2] sm:$0xf] }
  0x2c   :  { %v62_v17 = vld [vmem:[#allocation2 + $0x4] sm:$0xf]  ;;  %v814_v19 = vld [vmem:[#allocation5 + $0x80] sm:$0xff]   ;;  %v816_v21 = vld [vmem:[#allocation5 + $0x88] sm:$0xff]   ;;  %p889_p5 = por %p888_p4, %p887_p3 }
  0x2d   :  { %694 = vmatpush3.bf16.msra.mxu0 %v800_v3  ;;  %714 = vmatpush3.bf16.msra.mxu1 %v801_v4  ;;  %v815_v20 = vld [vmem:[#allocation5 + $0xc0] sm:$0xff]   ;;  %v817_v22 = vld [vmem:[#allocation5 + $0xc8] sm:$0xff]   ;;  %v818_v23 = vld [vmem:[#allocation5 + $0x90] sm:$0xff]  }
  0x2e   :  { %695 = vmatprep.subr.bf16.mxu0 %v914_v0  ;;  %715 = vmatprep.subr.bf16.mxu1 %v914_v0  ;;  %v819_v24 = vld [vmem:[#allocation5 + $0xd0] sm:$0xff]   ;;  %v820_v25 = vld [vmem:[#allocation5 + $0x98] sm:$0xff]   ;;  %v822_v27 = vld [vmem:[#allocation5 + $0xa0] sm:$0xff]   ;;  %p890_p6 = pnand %p889_p5, %p883_p2 }
  0x2f   :  { %v821_v26 = vld [vmem:[#allocation5 + $0xd8] sm:$0xff]   ;;  %v823_v28 = vld [vmem:[#allocation5 + $0xe0] sm:$0xff]   ;;  %v824_v29 = vld [vmem:[#allocation5 + $0xa8] sm:$0xff]  }
  0x30   :  { %v825_v30 = vld [vmem:[#allocation5 + $0xe8] sm:$0xff]   ;;  %v826_v31 = vld [vmem:[#allocation5 + $0xb0] sm:$0xff]   ;;  %v828_v33 = vld [vmem:[#allocation5 + $0xb8] sm:$0xff]  }
  0x31   :  { %696 = vmatpush3.bf16.msra.mxu0 %v802_v5  ;;  %716 = vmatpush3.bf16.msra.mxu1 %v803_v6  ;;  %v827_v32 = vld [vmem:[#allocation5 + $0xf0] sm:$0xff]   ;;  %v829_v34 = vld [vmem:[#allocation5 + $0xf8] sm:$0xff]   ;;  %v830_v36 = vld [vmem:[#allocation5 + $0x100] sm:$0xff]  }
  0x32   :  { %697 = vmatprep.subr.bf16.mxu0 %v914_v0  ;;  %717 = vmatprep.subr.bf16.mxu1 %v914_v0  ;;  %v257_v35 = vld [vmem:[#allocation2 + $0x8] sm:$0xf]  ;;  %v365_v37 = vld [vmem:[#allocation2 + $0xc] sm:$0xf]  ;;  %v831_v38 = vld [vmem:[#allocation5 + $0x108] sm:$0xff]  }
  0x33   :  { %v832_v39 = vld [vmem:[#allocation5 + $0x110] sm:$0xff]   ;;  %v833_v40 = vld [vmem:[#allocation5 + $0x118] sm:$0xff]   ;;  %v834_v41 = vld [vmem:[#allocation5 + $0x120] sm:$0xff]  }
  0x34   :  { %v835_v42 = vld [vmem:[#allocation5 + $0x128] sm:$0xff]   ;;  %v836_v43 = vld [vmem:[#allocation5 + $0x130] sm:$0xff]   ;;  %v837_v44 = vld [vmem:[#allocation5 + $0x138] sm:$0xff]  }
  0x35   :  { %698 = vmatpush3.bf16.msra.mxu0 %v804_v7  ;;  %718 = vmatpush3.bf16.msra.mxu1 %v805_v8  ;;  %v473_v45 = vld [vmem:[#allocation2 + $0x10] sm:$0xf]  ;;  %v645_v2 = vld [vmem:[%s1028_s2] ss:$0 sm:$0xff] }
  0x36   :  { %699 = vmatprep.subr.bf16.mxu0 %v914_v0  ;;  %719 = vmatprep.subr.bf16.mxu1 %v914_v0 }
  0x39   :  { %700 = vmatpush3.bf16.msra.mxu0 %v806_v9  ;;  %720 = vmatpush3.bf16.msra.mxu1 %v807_v10 }
  0x3a   :  { %701 = vmatprep.subr.bf16.mxu0 %v914_v0  ;;  %721 = vmatprep.subr.bf16.mxu1 %v914_v0 }
  0x3d   :  { %702 = vmatpush3.bf16.msra.mxu0 %v808_v11  ;;  %722 = vmatpush3.bf16.msra.mxu1 %v809_v12 }
  0x3e   :  { %703 = vmatprep.subr.bf16.mxu0 %v914_v0  ;;  %723 = vmatprep.subr.bf16.mxu1 %v914_v0 }
  0x41   :  { %704 = vmatpush3.bf16.msra.mxu0 %v810_v13  ;;  %724 = vmatpush3.bf16.msra.mxu1 %v811_v14 }
  0x42   :  { %705 = vmatprep.subr.bf16.mxu0 %v914_v0  ;;  %725 = vmatprep.subr.bf16.mxu1 %v914_v0 }
  0x45   :  { %706 = vmatpush3.bf16.msra.mxu0 %v812_v15  ;;  %726 = vmatpush3.bf16.msra.mxu1 %v813_v16 }
  0x46   :  { %731 = vmatprep.subr.bf16.mxu0 %v914_v0  ;;  %751 = vmatprep.subr.bf16.mxu1 %v914_v0 }
  0x48   :  { %708 = vmatmul.mubr.bf16.vlgmr.msra.gmra.mrb[0].mxu0 %v62_v17  ;;  %728 = vmatmul.mubr.bf16.vlgmr.msra.gmra.mrb[0].mxu1 %v44_v18 }
  0x49   :  { %732 = vmatpush3.bf16.msra.mxu0 %v814_v19  ;;  %752 = vmatpush3.bf16.msra.mxu1 %v815_v20 }
  0x4a   :  { %733 = vmatprep.subr.bf16.mxu0 %v914_v0  ;;  %753 = vmatprep.subr.bf16.mxu1 %v914_v0 }
  0x4b   :  { %747 = vmatprep.mubr.msk.bf16.mxu0 %vm915_vm0, %v914_v0  ;;  %767 = vmatprep.mubr.msk.bf16.mxu1 %vm915_vm0, %v914_v0 }
  0x4d   :  { %734 = vmatpush3.bf16.msra.mxu0 %v816_v21  ;;  %754 = vmatpush3.bf16.msra.mxu1 %v817_v22 }
  0x4e   :  { %735 = vmatprep.subr.bf16.mxu0 %v914_v0  ;;  %755 = vmatprep.subr.bf16.mxu1 %v914_v0 }
  0x51   :  { %736 = vmatpush3.bf16.msra.mxu0 %v818_v23  ;;  %756 = vmatpush3.bf16.msra.mxu1 %v819_v24 }
  0x52   :  { %737 = vmatprep.subr.bf16.mxu0 %v914_v0  ;;  %757 = vmatprep.subr.bf16.mxu1 %v914_v0 }
  0x55   :  { %738 = vmatpush3.bf16.msra.mxu0 %v820_v25  ;;  %758 = vmatpush3.bf16.msra.mxu1 %v821_v26 }
  0x56   :  { %739 = vmatprep.subr.bf16.mxu0 %v914_v0  ;;  %759 = vmatprep.subr.bf16.mxu1 %v914_v0 }
  0x59   :  { %740 = vmatpush3.bf16.msra.mxu0 %v822_v27  ;;  %760 = vmatpush3.bf16.msra.mxu1 %v823_v28 }
  0x5a   :  { %741 = vmatprep.subr.bf16.mxu0 %v914_v0  ;;  %761 = vmatprep.subr.bf16.mxu1 %v914_v0 }
  0x5d   :  { %742 = vmatpush3.bf16.msra.mxu0 %v824_v29  ;;  %762 = vmatpush3.bf16.msra.mxu1 %v825_v30 }
  0x5e   :  { %743 = vmatprep.subr.bf16.mxu0 %v914_v0  ;;  %763 = vmatprep.subr.bf16.mxu1 %v914_v0 }
  0x61   :  { %744 = vmatpush3.bf16.msra.mxu0 %v826_v31  ;;  %764 = vmatpush3.bf16.msra.mxu1 %v827_v32 }
  0x62   :  { %745 = vmatprep.subr.bf16.mxu0 %v914_v0  ;;  %765 = vmatprep.subr.bf16.mxu1 %v914_v0 }
  0x65   :  { %746 = vmatpush3.bf16.msra.mxu0 %v828_v33  ;;  %766 = vmatpush3.bf16.msra.mxu1 %v829_v34 }
  0x66   :  { %771 = vmatprep.subr.bf16.mxu0 %v914_v0 }
  0x68   :  { %748 = vmatmul.mubr.bf16.vlgmr.msra.gmra.mrb[4].mxu0 %v257_v35  ;;  %768 = vmatmul.mubr.bf16.vlgmr.msra.gmra.mrb[4].mxu1 %v365_v37 }
  0x69   :  { %772 = vmatpush3.bf16.msra.mxu0 %v830_v36  ;;  %787 = vmatprep.mubr.msk.bf16.mxu0 %vm915_vm0, %v914_v0 }
  0x6a   :  { %773 = vmatprep.subr.bf16.mxu0 %v914_v0 }
  0x6d   :  { %774 = vmatpush3.bf16.msra.mxu0 %v831_v38 }
  0x6e   :  { %775 = vmatprep.subr.bf16.mxu0 %v914_v0 }
  0x71   :  { %776 = vmatpush3.bf16.msra.mxu0 %v832_v39 }
  0x72   :  { %777 = vmatprep.subr.bf16.mxu0 %v914_v0 }
  0x75   :  { %778 = vmatpush3.bf16.msra.mxu0 %v833_v40 }
  0x76   :  { %779 = vmatprep.subr.bf16.mxu0 %v914_v0 }
  0x79   :  { %780 = vmatpush3.bf16.msra.mxu0 %v834_v41 }
  0x7a   :  { %781 = vmatprep.subr.bf16.mxu0 %v914_v0 }
  0x7d   :  { %782 = vmatpush3.bf16.msra.mxu0 %v835_v42 }
  0x7e   :  { %783 = vmatprep.subr.bf16.mxu0 %v914_v0 }
  0x81   :  { %784 = vmatpush3.bf16.msra.mxu0 %v836_v43 }
  0x82   :  { %785 = vmatprep.subr.bf16.mxu0 %v914_v0 }
  0x85   :  { %786 = vmatpush3.bf16.msra.mxu0 %v837_v44 }
  0x88   :  { %788 = vmatmul.mubr.bf16.vlgmr.msra.gmra.mrb[8].mxu0 %v473_v45 }
 0x11b   :  { %v162_v46 = vpop.f32.mrb[0].mxu0  ;;  %v250_v48 = vpop.f32.mrb[0].mxu1 }
 0x11c   :  { %v709_v47 = vpop.f32.mrb[1].mxu0  ;;  %v251_v49 = vadd.f32 %v250_v48, %v162_v46  ;;  %v729_v51 = vpop.f32.mrb[1].mxu1 }
 0x11d   :  { %v165_v50 = vpop.f32.mrb[2].mxu0  ;;  %v253_v53 = vpop.f32.mrb[2].mxu1 }
 0x11e   :  { %v710_v52 = vpop.f32.mrb[3].mxu0  ;;  %v730_v54 = vpop.f32.mrb[3].mxu1 }
 0x13b   :  { %v357_v55 = vpop.f32.mrb[4].mxu0  ;;  %v465_v58 = vpop.f32.mrb[4].mxu1 }
 0x13c   :  { %v363_v56 = vadd.f32 %v357_v55, %v251_v49  ;;  %v749_v57 = vpop.f32.mrb[5].mxu0  ;;  %v769_v60 = vpop.f32.mrb[5].mxu1 }
 0x13d   :  { %v360_v59 = vpop.f32.mrb[6].mxu0  ;;  %v468_v63 = vpop.f32.mrb[6].mxu1 }
 0x13e   :  { %v471_v61 = vadd.f32 %v465_v58, %v363_v56  ;;  %v750_v62 = vpop.f32.mrb[7].mxu0  ;;  %v770_v0 = vpop.f32.mrb[7].mxu1 }
 0x15b   :  { %v573_v1 = vpop.f32.mrb[8].mxu0 }
 0x15c   :  { %v579_v3 = vadd.f32 %v573_v1, %v471_v61  ;;  %v789_v4 = vpop.f32.mrb[9].mxu0 }
 0x15d   :  { %v576_v5 = vpop.f32.mrb[10].mxu0 }
 0x15e   :  { %v587_v6 = vadd.f32 %v645_v2, %v579_v3  ;;  %v790_v7 = vpop.f32.mrb[11].mxu0 }
 0x160   :  { %588 = vst [vmem:[#allocation7] sm:$0xff] %v587_v6 }
 0x161   :  { %893 = shalt.err (!%p890_p6)
}
 0x162   :  { %s894_s2 = scalar_lea.hbm %s1029_s3, 128 }
 0x163   :  { %p895_p7 = scmp.ne.s32.totalorder %s1029_s3, %s894_s2  ;;  %p898_p8 = scmp.lt.u32.totalorder %s894_s2, %s1029_s3 }
 0x165   :  { %p900_p9 = pnand %p898_p8, %p895_p7 }
 0x167   :  { %903 = shalt.err (!%p900_p9)
}
 0x168   :  { %598 = dma.vmem_to_hbm [thread:$0]  %s596_s12, 128, %s1029_s3, [#allocation4]  }
 0x169   :  { %908 = dma.done.wait [#allocation4], 128  }
 0x16a   :  { %909 = vsyncadd [#allocation4], 4294967168 }
 0x16b   :  { %602 = vsyncpa [#allocation3], 1 }
 0x16c   :  { %603 = vsyncpa [#allocation6], 1 }
 0x16d   :  { %604 = vsyncpa [#allocation4], 1 }

// kernel: tpu_custom_call.1
= control target key start
LH: loop header
LB: loop body
LE: loop exit
PB: predicated region body
PF: predicated region fallthrough
CT: control target
= control target key end

     0   :  { %8 = vsyncpa [#allocation3], 0  ;;  %s1026_s0 = inlined_call_operand.hbm [shape: bf16[5,8,128], index: 0, kind: input, shape index: {}]   ;;  %s1027_s1 = inlined_call_operand.hbm [shape: bf16[5,128,128], index: 1, kind: input, shape index: {}]   ;;  %s1028_s2 = inlined_call_operand.vmem [shape: f32[1,128], index: 2, kind: input, shape index: {}]   ;;  %s1029_s3 = inlined_call_operand.hbm [shape: f32[8,128], index: 3, kind: output, shape index: {}]  }
   0x1   :  { %9 = vsyncpa [#allocation6], 0 }
   0x2   :  { %10 = vsyncpa [#allocation4], 0  ;;  %s910_s12 = smov [#allocation2]   ;;  %s838_s16 = scalar_lea.hbm %s1026_s0, 320 }
   0x3   :  { %s16_s13 = sshll.u32 %s910_s12, 4  ;;  %p839_p0 = scmp.ne.s32.totalorder %s1026_s0, %s838_s16  ;;  %s17_s13 = int_to_ptr.vmem [resolvable:$true] %s16_s13 }
   0x4   :  { %p842_p1 = scmp.lt.u32.totalorder %s838_s16, %s1026_s0 }
   0x6   :  { %p844_p2 = pnand %p842_p1, %p839_p0 }
   0x8   :  { %847 = shalt.err (!%p844_p2)
}
   0x9   :  { %s848_s21 = scalar_lea.vmem %s17_s13, 320  ;;  %p853_p4 = scmp.lt.s32.totalorder %s17_s13, %s17_s13 }
   0xa   :  { %p849_p3 = scmp.ne.s32.totalorder %s17_s13, %s848_s21  ;;  %p854_p5 = scmp.lt.s32.totalorder %s848_s21, %s848_s21 }
   0xc   :  { %p855_p6 = por %p854_p5, %p853_p4 }
   0xe   :  { %p856_p7 = pnand %p855_p6, %p849_p3 }
  0x10   :  { %859 = shalt.err (!%p856_p7)
}
  0x11   :  { %s911_s22 = smov 64   ;;  %s912_s23 = smov 4  }
  0x12   :  { %22 = dma.hbm_to_vmem [thread:$0]  %s1026_s0, 320, %s17_s13, [#allocation3], %s911_s22, %s911_s22, %s912_s23  }
  0x13   :  { %s913_s26 = smov [#allocation5]   ;;  %s860_s30 = scalar_lea.hbm %s1027_s1, 5120 }
  0x14   :  { %s28_s27 = sshll.u32 %s913_s26, 4  ;;  %p861_p8 = scmp.ne.s32.totalorder %s1027_s1, %s860_s30  ;;  %s29_s27 = int_to_ptr.vmem [resolvable:$true] %s28_s27 }
  0x15   :  { %p864_p9 = scmp.lt.u32.totalorder %s860_s30, %s1027_s1 }
  0x17   :  { %p866_p10 = pnand %p864_p9, %p861_p8 }
  0x19   :  { %869 = shalt.err (!%p866_p10)
}
  0x1a   :  { %s870_s8 = scalar_lea.vmem %s29_s27, 5120  ;;  %p875_p12 = scmp.lt.s32.totalorder %s29_s27, %s29_s27 }
  0x1b   :  { %p871_p11 = scmp.ne.s32.totalorder %s29_s27, %s870_s8  ;;  %p876_p13 = scmp.lt.s32.totalorder %s870_s8, %s870_s8 }
  0x1d   :  { %p877_p0 = por %p876_p13, %p875_p12 }
  0x1f   :  { %p878_p1 = pnand %p877_p0, %p871_p11 }
  0x21   :  { %881 = shalt.err (!%p878_p1)
}
  0x22   :  { %34 = dma.hbm_to_vmem [thread:$0]  %s1027_s1, 5120, %s29_s27, [#allocation6], %s911_s22, %s911_s22, %s912_s23  }
  0x23   :  { %904 = dma.done.wait [#allocation3], 320  }
  0x24   :  { %905 = vsyncadd [#allocation3], 4294966976 }
  0x25   :  { %906 = dma.done.wait [#allocation6], 5120  }
  0x26   :  { %907 = vsyncadd [#allocation6], 4294962176  ;;  %v914_v0 = vmov 0.0   ;;  %vm915_vm0 = vmmov 0   ;;  %v798_v1 = vld [vmem:[#allocation5 + $0x40] sm:$0xff]   ;;  %v800_v3 = vld [vmem:[#allocation5 + $0x48] sm:$0xff]  }
  0x27   :  { %691 = vmatprep.subr.bf16.mxu0 %v914_v0  ;;  %711 = vmatprep.subr.bf16.mxu1 %v914_v0  ;;  %v799_v2 = vld [vmem:[#allocation5] sm:$0xff]   ;;  %v801_v4 = vld [vmem:[#allocation5 + $0x8] sm:$0xff]   ;;  %v802_v5 = vld [vmem:[#allocation5 + $0x50] sm:$0xff]   ;;  %s916_s11 = smov [#allocation7]  }
  0x28   :  { %707 = vmatprep.mubr.msk.bf16.mxu0 %vm915_vm0, %v914_v0  ;;  %727 = vmatprep.mubr.msk.bf16.mxu1 %vm915_vm0, %v914_v0  ;;  %v803_v6 = vld [vmem:[#allocation5 + $0x10] sm:$0xff]   ;;  %v804_v7 = vld [vmem:[#allocation5 + $0x58] sm:$0xff]   ;;  %v806_v9 = vld [vmem:[#allocation5 + $0x60] sm:$0xff]   ;;  %s595_s12 = sshll.u32 %s916_s11, 4  ;;  %s596_s12 = int_to_ptr.vmem [resolvable:$true] %s595_s12 }
  0x29   :  { %692 = vmatpush3.bf16.msra.mxu0 %v798_v1  ;;  %712 = vmatpush3.bf16.msra.mxu1 %v799_v2  ;;  %v805_v8 = vld [vmem:[#allocation5 + $0x18] sm:$0xff]   ;;  %v807_v10 = vld [vmem:[#allocation5 + $0x20] sm:$0xff]   ;;  %v808_v11 = vld [vmem:[#allocation5 + $0x68] sm:$0xff]   ;;  %s882_s13 = scalar_lea.vmem %s596_s12, 128  ;;  %p887_p3 = scmp.lt.s32.totalorder %s596_s12, %s596_s12 }
  0x2a   :  { %693 = vmatprep.subr.bf16.mxu0 %v914_v0  ;;  %713 = vmatprep.subr.bf16.mxu1 %v914_v0  ;;  %v809_v12 = vld [vmem:[#allocation5 + $0x28] sm:$0xff]   ;;  %v810_v13 = vld [vmem:[#allocation5 + $0x70] sm:$0xff]   ;;  %v812_v15 = vld [vmem:[#allocation5 + $0x78] sm:$0xff]   ;;  %p883_p2 = scmp.ne.s32.totalorder %s596_s12, %s882_s13  ;;  %p888_p4 = scmp.lt.s32.totalorder %s882_s13, %s882_s13 }
  0x2b   :  { %v811_v14 = vld [vmem:[#allocation5 + $0x30] sm:$0xff]   ;;  %v813_v16 = vld [vmem:[#allocation5 + $0x38] sm:$0xff]   ;;  %v44_v18 = vld [vmem:[#allocation2] sm:$0xf] }
  0x2c   :  { %v62_v17 = vld [vmem:[#allocation2 + $0x4] sm:$0xf]  ;;  %v814_v19 = vld [vmem:[#allocation5 + $0x80] sm:$0xff]   ;;  %v816_v21 = vld [vmem:[#allocation5 + $0x88] sm:$0xff]   ;;  %p889_p5 = por %p888_p4, %p887_p3 }
  0x2d   :  { %694 = vmatpush3.bf16.msra.mxu0 %v800_v3  ;;  %714 = vmatpush3.bf16.msra.mxu1 %v801_v4  ;;  %v815_v20 = vld [vmem:[#allocation5 + $0xc0] sm:$0xff]   ;;  %v817_v22 = vld [vmem:[#allocation5 + $0xc8] sm:$0xff]   ;;  %v818_v23 = vld [vmem:[#allocation5 + $0x90] sm:$0xff]  }
  0x2e   :  { %695 = vmatprep.subr.bf16.mxu0 %v914_v0  ;;  %715 = vmatprep.subr.bf16.mxu1 %v914_v0  ;;  %v819_v24 = vld [vmem:[#allocation5 + $0xd0] sm:$0xff]   ;;  %v820_v25 = vld [vmem:[#allocation5 + $0x98] sm:$0xff]   ;;  %v822_v27 = vld [vmem:[#allocation5 + $0xa0] sm:$0xff]   ;;  %p890_p6 = pnand %p889_p5, %p883_p2 }
  0x2f   :  { %v821_v26 = vld [vmem:[#allocation5 + $0xd8] sm:$0xff]   ;;  %v823_v28 = vld [vmem:[#allocation5 + $0xe0] sm:$0xff]   ;;  %v824_v29 = vld [vmem:[#allocation5 + $0xa8] sm:$0xff]  }
  0x30   :  { %v825_v30 = vld [vmem:[#allocation5 + $0xe8] sm:$0xff]   ;;  %v826_v31 = vld [vmem:[#allocation5 + $0xb0] sm:$0xff]   ;;  %v828_v33 = vld [vmem:[#allocation5 + $0xb8] sm:$0xff]  }
  0x31   :  { %696 = vmatpush3.bf16.msra.mxu0 %v802_v5  ;;  %716 = vmatpush3.bf16.msra.mxu1 %v803_v6  ;;  %v827_v32 = vld [vmem:[#allocation5 + $0xf0] sm:$0xff]   ;;  %v829_v34 = vld [vmem:[#allocation5 + $0xf8] sm:$0xff]   ;;  %v830_v36 = vld [vmem:[#allocation5 + $0x100] sm:$0xff]  }
  0x32   :  { %697 = vmatprep.subr.bf16.mxu0 %v914_v0  ;;  %717 = vmatprep.subr.bf16.mxu1 %v914_v0  ;;  %v257_v35 = vld [vmem:[#allocation2 + $0x8] sm:$0xf]  ;;  %v365_v37 = vld [vmem:[#allocation2 + $0xc] sm:$0xf]  ;;  %v831_v38 = vld [vmem:[#allocation5 + $0x108] sm:$0xff]  }
  0x33   :  { %v832_v39 = vld [vmem:[#allocation5 + $0x110] sm:$0xff]   ;;  %v833_v40 = vld [vmem:[#allocation5 + $0x118] sm:$0xff]   ;;  %v834_v41 = vld [vmem:[#allocation5 + $0x120] sm:$0xff]  }
  0x34   :  { %v835_v42 = vld [vmem:[#allocation5 + $0x128] sm:$0xff]   ;;  %v836_v43 = vld [vmem:[#allocation5 + $0x130] sm:$0xff]   ;;  %v837_v44 = vld [vmem:[#allocation5 + $0x138] sm:$0xff]  }
  0x35   :  { %698 = vmatpush3.bf16.msra.mxu0 %v804_v7  ;;  %718 = vmatpush3.bf16.msra.mxu1 %v805_v8  ;;  %v473_v45 = vld [vmem:[#allocation2 + $0x10] sm:$0xf]  ;;  %v645_v2 = vld [vmem:[%s1028_s2] ss:$0 sm:$0xff] }
  0x36   :  { %699 = vmatprep.subr.bf16.mxu0 %v914_v0  ;;  %719 = vmatprep.subr.bf16.mxu1 %v914_v0 }
  0x39   :  { %700 = vmatpush3.bf16.msra.mxu0 %v806_v9  ;;  %720 = vmatpush3.bf16.msra.mxu1 %v807_v10 }
  0x3a   :  { %701 = vmatprep.subr.bf16.mxu0 %v914_v0  ;;  %721 = vmatprep.subr.bf16.mxu1 %v914_v0 }
  0x3d   :  { %702 = vmatpush3.bf16.msra.mxu0 %v808_v11  ;;  %722 = vmatpush3.bf16.msra.mxu1 %v809_v12 }
  0x3e   :  { %703 = vmatprep.subr.bf16.mxu0 %v914_v0  ;;  %723 = vmatprep.subr.bf16.mxu1 %v914_v0 }
  0x41   :  { %704 = vmatpush3.bf16.msra.mxu0 %v810_v13  ;;  %724 = vmatpush3.bf16.msra.mxu1 %v811_v14 }
  0x42   :  { %705 = vmatprep.subr.bf16.mxu0 %v914_v0  ;;  %725 = vmatprep.subr.bf16.mxu1 %v914_v0 }
  0x45   :  { %706 = vmatpush3.bf16.msra.mxu0 %v812_v15  ;;  %726 = vmatpush3.bf16.msra.mxu1 %v813_v16 }
  0x46   :  { %731 = vmatprep.subr.bf16.mxu0 %v914_v0  ;;  %751 = vmatprep.subr.bf16.mxu1 %v914_v0 }
  0x48   :  { %708 = vmatmul.mubr.bf16.vlgmr.msra.gmra.mrb[0].mxu0 %v62_v17  ;;  %728 = vmatmul.mubr.bf16.vlgmr.msra.gmra.mrb[0].mxu1 %v44_v18 }
  0x49   :  { %732 = vmatpush3.bf16.msra.mxu0 %v814_v19  ;;  %752 = vmatpush3.bf16.msra.mxu1 %v815_v20 }
  0x4a   :  { %733 = vmatprep.subr.bf16.mxu0 %v914_v0  ;;  %753 = vmatprep.subr.bf16.mxu1 %v914_v0 }
  0x4b   :  { %747 = vmatprep.mubr.msk.bf16.mxu0 %vm915_vm0, %v914_v0  ;;  %767 = vmatprep.mubr.msk.bf16.mxu1 %vm915_vm0, %v914_v0 }
  0x4d   :  { %734 = vmatpush3.bf16.msra.mxu0 %v816_v21  ;;  %754 = vmatpush3.bf16.msra.mxu1 %v817_v22 }
  0x4e   :  { %735 = vmatprep.subr.bf16.mxu0 %v914_v0  ;;  %755 = vmatprep.subr.bf16.mxu1 %v914_v0 }
  0x51   :  { %736 = vmatpush3.bf16.msra.mxu0 %v818_v23  ;;  %756 = vmatpush3.bf16.msra.mxu1 %v819_v24 }
  0x52   :  { %737 = vmatprep.subr.bf16.mxu0 %v914_v0  ;;  %757 = vmatprep.subr.bf16.mxu1 %v914_v0 }
  0x55   :  { %738 = vmatpush3.bf16.msra.mxu0 %v820_v25  ;;  %758 = vmatpush3.bf16.msra.mxu1 %v821_v26 }
  0x56   :  { %739 = vmatprep.subr.bf16.mxu0 %v914_v0  ;;  %759 = vmatprep.subr.bf16.mxu1 %v914_v0 }
  0x59   :  { %740 = vmatpush3.bf16.msra.mxu0 %v822_v27  ;;  %760 = vmatpush3.bf16.msra.mxu1 %v823_v28 }
  0x5a   :  { %741 = vmatprep.subr.bf16.mxu0 %v914_v0  ;;  %761 = vmatprep.subr.bf16.mxu1 %v914_v0 }
  0x5d   :  { %742 = vmatpush3.bf16.msra.mxu0 %v824_v29  ;;  %762 = vmatpush3.bf16.msra.mxu1 %v825_v30 }
  0x5e   :  { %743 = vmatprep.subr.bf16.mxu0 %v914_v0  ;;  %763 = vmatprep.subr.bf16.mxu1 %v914_v0 }
  0x61   :  { %744 = vmatpush3.bf16.msra.mxu0 %v826_v31  ;;  %764 = vmatpush3.bf16.msra.mxu1 %v827_v32 }
  0x62   :  { %745 = vmatprep.subr.bf16.mxu0 %v914_v0  ;;  %765 = vmatprep.subr.bf16.mxu1 %v914_v0 }
  0x65   :  { %746 = vmatpush3.bf16.msra.mxu0 %v828_v33  ;;  %766 = vmatpush3.bf16.msra.mxu1 %v829_v34 }
  0x66   :  { %771 = vmatprep.subr.bf16.mxu0 %v914_v0 }
  0x68   :  { %748 = vmatmul.mubr.bf16.vlgmr.msra.gmra.mrb[4].mxu0 %v257_v35  ;;  %768 = vmatmul.mubr.bf16.vlgmr.msra.gmra.mrb[4].mxu1 %v365_v37 }
  0x69   :  { %772 = vmatpush3.bf16.msra.mxu0 %v830_v36  ;;  %787 = vmatprep.mubr.msk.bf16.mxu0 %vm915_vm0, %v914_v0 }
  0x6a   :  { %773 = vmatprep.subr.bf16.mxu0 %v914_v0 }
  0x6d   :  { %774 = vmatpush3.bf16.msra.mxu0 %v831_v38 }
  0x6e   :  { %775 = vmatprep.subr.bf16.mxu0 %v914_v0 }
  0x71   :  { %776 = vmatpush3.bf16.msra.mxu0 %v832_v39 }
  0x72   :  { %777 = vmatprep.subr.bf16.mxu0 %v914_v0 }
  0x75   :  { %778 = vmatpush3.bf16.msra.mxu0 %v833_v40 }
  0x76   :  { %779 = vmatprep.subr.bf16.mxu0 %v914_v0 }
  0x79   :  { %780 = vmatpush3.bf16.msra.mxu0 %v834_v41 }
  0x7a   :  { %781 = vmatprep.subr.bf16.mxu0 %v914_v0 }
  0x7d   :  { %782 = vmatpush3.bf16.msra.mxu0 %v835_v42 }
  0x7e   :  { %783 = vmatprep.subr.bf16.mxu0 %v914_v0 }
  0x81   :  { %784 = vmatpush3.bf16.msra.mxu0 %v836_v43 }
  0x82   :  { %785 = vmatprep.subr.bf16.mxu0 %v914_v0 }
  0x85   :  { %786 = vmatpush3.bf16.msra.mxu0 %v837_v44 }
  0x88   :  { %788 = vmatmul.mubr.bf16.vlgmr.msra.gmra.mrb[8].mxu0 %v473_v45 }
 0x11b   :  { %v162_v46 = vpop.f32.mrb[0].mxu0  ;;  %v250_v48 = vpop.f32.mrb[0].mxu1 }
 0x11c   :  { %v709_v47 = vpop.f32.mrb[1].mxu0  ;;  %v251_v49 = vadd.f32 %v250_v48, %v162_v46  ;;  %v729_v51 = vpop.f32.mrb[1].mxu1 }
 0x11d   :  { %v165_v50 = vpop.f32.mrb[2].mxu0  ;;  %v253_v53 = vpop.f32.mrb[2].mxu1 }
 0x11e   :  { %v710_v52 = vpop.f32.mrb[3].mxu0  ;;  %v730_v54 = vpop.f32.mrb[3].mxu1 }
 0x13b   :  { %v357_v55 = vpop.f32.mrb[4].mxu0  ;;  %v465_v58 = vpop.f32.mrb[4].mxu1 }
 0x13c   :  { %v363_v56 = vadd.f32 %v357_v55, %v251_v49  ;;  %v749_v57 = vpop.f32.mrb[5].mxu0  ;;  %v769_v60 = vpop.f32.mrb[5].mxu1 }
 0x13d   :  { %v360_v59 = vpop.f32.mrb[6].mxu0  ;;  %v468_v63 = vpop.f32.mrb[6].mxu1 }
 0x13e   :  { %v471_v61 = vadd.f32 %v465_v58, %v363_v56  ;;  %v750_v62 = vpop.f32.mrb[7].mxu0  ;;  %v770_v0 = vpop.f32.mrb[7].mxu1 }
 0x15b   :  { %v573_v1 = vpop.f32.mrb[8].mxu0 }
 0x15c   :  { %v579_v3 = vadd.f32 %v573_v1, %v471_v61  ;;  %v789_v4 = vpop.f32.mrb[9].mxu0 }
 0x15d   :  { %v576_v5 = vpop.f32.mrb[10].mxu0 }
 0x15e   :  { %v587_v6 = vadd.f32 %v645_v2, %v579_v3  ;;  %v790_v7 = vpop.f32.mrb[11].mxu0 }
 0x160   :  { %588 = vst [vmem:[#allocation7] sm:$0xff] %v587_v6 }
 0x161   :  { %893 = shalt.err (!%p890_p6)
}
 0x162   :  { %s894_s2 = scalar_lea.hbm %s1029_s3, 128 }
 0x163   :  { %p895_p7 = scmp.ne.s32.totalorder %s1029_s3, %s894_s2  ;;  %p898_p8 = scmp.lt.u32.totalorder %s894_s2, %s1029_s3 }
 0x165   :  { %p900_p9 = pnand %p898_p8, %p895_p7 }
 0x167   :  { %903 = shalt.err (!%p900_p9)
}
 0x168   :  { %598 = dma.vmem_to_hbm [thread:$0]  %s596_s12, 128, %s1029_s3, [#allocation4]  }
 0x169   :  { %908 = dma.done.wait [#allocation4], 128  }
 0x16a   :  { %909 = vsyncadd [#allocation4], 4294967168 }
 0x16b   :  { %602 = vsyncpa [#allocation3], 1 }
 0x16c   :  { %603 = vsyncpa [#allocation6], 1 }
 0x16d   :  { %604 = vsyncpa [#allocation4], 1 }

</bundles_post_ra>
